<compile_context>
chip_gen: v7x
topology: tpu7x:2x2x1
jax: 0.10.0
libtpu: 0.0.40
codegen_flags: <defaults>
</compile_context>

<pallas_src>
import functools

import numpy as np
import jax
import jax.numpy as jnp
from jax.experimental import pallas as pl
from jax.experimental.pallas import tpu as pltpu


# ------------------------------- helpers ------------------------------------

def _round_up(x, m):
    return ((x + m - 1) // m) * m


def _vmem_limit_bytes():
    # ~75% of physical VMEM (≈48 MiB on v7x, ≈96 MiB on v5e/v6e), capped at 100 MiB.
    try:
        cap = int(pltpu.get_tpu_info().vmem_capacity_bytes)
    except Exception:
        cap = 64 * 1024 * 1024
    return min((cap * 3) // 4, 100 * 1024 * 1024)


# ----------------------- cached host-side constant matrices -----------------

@functools.lru_cache(maxsize=None)
def _welch_dft_np(n, fpad, fs):
    """Packed Welch real-DFT matrix (n, 2*fpad): [cos | sin] columns, each half zero-padded
    to fpad lanes, with the periodic Hann window folded into the rows and sqrt(one-sided
    PSD scale) folded into the columns."""
    F = n // 2 + 1
    t = np.arange(n, dtype=np.float64)
    k = np.arange(F, dtype=np.float64)
    ang = 2.0 * np.pi * np.outer(t, k) / n
    win = 0.5 - 0.5 * np.cos(2.0 * np.pi * t / n)            # periodic Hann
    scale = np.full(F, 2.0)
    scale[0] = 1.0
    if n % 2 == 0:
        scale[-1] = 1.0
    scale /= fs * np.sum(win ** 2)
    sq = np.sqrt(scale)
    out = np.zeros((n, 2 * fpad), np.float32)
    out[:, :F] = np.cos(ang) * win[:, None] * sq[None, :]
    out[:, fpad:fpad + F] = np.sin(ang) * win[:, None] * sq[None, :]
    return out


@functools.lru_cache(maxsize=None)
def _fwd_dft_np(n, fpad):
    """Packed forward real-DFT matrix (n, 2*fpad): [cos | sin], halves zero-padded to fpad.
    x @ M = [re | -im]."""
    F = n // 2 + 1
    t = np.arange(n, dtype=np.float64)
    k = np.arange(F, dtype=np.float64)
    ang = 2.0 * np.pi * np.outer(t, k) / n
    out = np.zeros((n, 2 * fpad), np.float32)
    out[:, :F] = np.cos(ang)
    out[:, fpad:fpad + F] = np.sin(ang)
    return out


@functools.lru_cache(maxsize=None)
def _inv_dft_np(n, fpad, pad, fs):
    """Packed inverse real-DFT matrix (2*fpad, n - 2*pad): [[cos*w/N],[sin*w/N]] rows, halves
    zero-padded to fpad.  1/N, one-sided doubling, sqrt(2/fs) whitening normalization and the
    fduration/2 edge crop are all baked in, so x_cropped = [re | -im] @ M."""
    F = n // 2 + 1
    k = np.arange(F, dtype=np.float64)
    t = np.arange(n - 2 * pad, dtype=np.float64) + float(pad)
    ang = 2.0 * np.pi * np.outer(k, t) / n
    w = np.full(F, 2.0)
    w[0] = 1.0
    if n % 2 == 0:
        w[-1] = 1.0
    w = w / n * np.sqrt(2.0 / fs)
    out = np.zeros((2 * fpad, n - 2 * pad), np.float32)
    out[:F] = np.cos(ang) * w[:, None]
    out[fpad:fpad + F] = np.sin(ang) * w[:, None]
    return out


@functools.lru_cache(maxsize=None)
def _interp_np(n_old, fpad_old, n_new, fpad_new, fs):
    """Linear-interpolation matrix (fpad_old, fpad_new) from the Welch frequency grid to the
    length-n_new rFFT grid (matches jnp.interp with endpoint clamping); zero-padded."""
    f_old = np.arange(n_old // 2 + 1, dtype=np.float64) * fs / n_old
    f_new = np.arange(n_new // 2 + 1, dtype=np.float64) * fs / n_new
    idx = np.clip(np.searchsorted(f_old, f_new, side="right") - 1, 0, len(f_old) - 2)
    t = np.clip((f_new - f_old[idx]) / (f_old[idx + 1] - f_old[idx]), 0.0, 1.0)
    M = np.zeros((fpad_old, fpad_new), np.float32)
    cols = np.arange(len(f_new))
    M[idx, cols] += (1.0 - t).astype(np.float32)
    M[idx + 1, cols] += t.astype(np.float32)
    return M


@functools.lru_cache(maxsize=None)
def _avg_np(C, nseg):
    """Per-channel segment-mean matrix (C, nseg*C) for power rows ordered (seg, chan)."""
    return np.tile(np.eye(C, dtype=np.float32) / nseg, (1, nseg))


# ------------------------------ fused kernel --------------------------------

def _fused_kernel(Fwp, Fp, B, C, nw, step, ksize,
                  segs_ref, wdft_ref, avg_ref, interp_ref,
                  x_ref, mf_ref, mi_ref, o_ref):
    """One grid step: Welch PSD -> PSD interp -> whitening -> window unfold, all in VMEM."""
    f32 = jnp.float32

    # --- Welch PSD (Hann window & one-sided scaling folded into wdft) --------------------
    reim = jnp.dot(segs_ref[...].astype(wdft_ref.dtype), wdft_ref[...],
                   preferred_element_type=f32)                       # (nseg*C, 2*Fwp)
    power = reim[:, :Fwp] ** 2 + reim[:, Fwp:] ** 2                  # lane-aligned split
    psd = jnp.dot(avg_ref[...], power, preferred_element_type=f32)   # (C, Fwp)

    # --- interpolate PSD onto the length-T rFFT grid and invert to 1/ASD -----------------
    psd_i = jnp.dot(psd, interp_ref[...], preferred_element_type=f32)  # (C, Fp)
    inv_asd = jax.lax.rsqrt(psd_i + 1e-20)                           # sqrt(2/fs) lives in mi
    inv2 = jnp.concatenate([inv_asd, inv_asd], axis=-1)              # (C, 2*Fp)
    inv2 = jnp.concatenate([inv2] * B, axis=0)                       # (B*C, 2*Fp), rows (b, c)

    # --- frequency-domain whitening, batch*channels folded into the matmul M dim ---------
    reim2 = jnp.dot(x_ref[...].astype(mf_ref.dtype), mf_ref[...],
                    preferred_element_type=f32)                      # (B*C, 2*Fp) = [re | -im]
    reim2 = reim2 * inv2
    xw = jnp.dot(reim2.astype(mi_ref.dtype), mi_ref[...],
                 preferred_element_type=f32)                         # (B*C, Tw), crop baked in

    # --- unfold windows straight out of the resident whitened block ----------------------
    for b in range(B):                                               # static unroll
        rows = xw[b * C:(b + 1) * C, :]                              # (C, Tw)
        for w in range(nw):
            o_ref[b, w, :, :] = rows[:, w * step: w * step + ksize]


# ------------------------------ BatchGenerator ------------------------------

class BatchGenerator:
    def __init__(self, num_channels, kernel_length, fduration, psd_length,
                 inference_sampling_rate, sample_rate, dft_dtype=jnp.bfloat16):
        self.sample_rate = float(sample_rate)
        self.step_size = int(sample_rate / inference_sampling_rate)
        self.kernel_size = int(kernel_length * sample_rate)
        self.fsize = int(fduration * sample_rate)
        self.psd_size = int(psd_length * sample_rate)
        self.num_channels = num_channels
        # Welch config: segment length == fduration window, 50% overlap
        self.nperseg = self.fsize
        self.stride = self.nperseg // 2
        self.dft_dtype = dft_dtype

    @property
    def state_size(self):
        return self.psd_size + self.kernel_size + self.fsize - self.step_size

    def get_initial_state(self):
        return jnp.zeros((2, self.num_channels, self.state_size), jnp.float32)

    # -- fused spectral_density + whitener + unfold_windows --
    def _fused(self, bg, Xr):
        B, C, T = Xr.shape
        n, stride = self.nperseg, self.stride
        nseg = (self.psd_size - n) // stride + 1
        Fwp = _round_up(n // 2 + 1, 128)
        Fp = _round_up(T // 2 + 1, 128)
        pad = self.fsize // 2
        Tw = T - 2 * pad
        nw = (Tw - self.kernel_size) // self.step_size + 1

        # constant matrices: built once on host (lru_cached numpy), folded as jit constants
        wdft = jnp.asarray(_welch_dft_np(n, Fwp, self.sample_rate), dtype=self.dft_dtype)
        mf = jnp.asarray(_fwd_dft_np(T, Fp), dtype=self.dft_dtype)
        mi = jnp.asarray(_inv_dft_np(T, Fp, pad, self.sample_rate), dtype=self.dft_dtype)
        avg = jnp.asarray(_avg_np(C, nseg))
        interp = jnp.asarray(_interp_np(n, Fwp, T, Fp, self.sample_rate))

        # 50%-overlap segmentation of the PSD background done in plain JAX (rows: (seg, chan))
        segs = jnp.concatenate(
            [bg[:, s * stride: s * stride + n] for s in range(nseg)], axis=0
        ).astype(jnp.float32)                                        # (nseg*C, n)
        x2 = Xr.reshape(B * C, T).astype(jnp.float32)                # fold B, C into matmul M

        kernel = functools.partial(
            _fused_kernel, Fwp, Fp, B, C, nw, self.step_size, self.kernel_size)

        return pl.pallas_call(
            kernel,
            out_shape=jax.ShapeDtypeStruct((B, nw, C, self.kernel_size), jnp.float32),
            grid=(1,),
            in_specs=[
                pl.BlockSpec((nseg * C, n), lambda i: (0, 0)),
                pl.BlockSpec((n, 2 * Fwp), lambda i: (0, 0)),
                pl.BlockSpec((C, nseg * C), lambda i: (0, 0)),
                pl.BlockSpec((Fwp, Fp), lambda i: (0, 0)),
                pl.BlockSpec((B * C, T), lambda i: (0, 0)),
                pl.BlockSpec((T, 2 * Fp), lambda i: (0, 0)),
                pl.BlockSpec((2 * Fp, Tw), lambda i: (0, 0)),
            ],
            out_specs=pl.BlockSpec((B, nw, C, self.kernel_size), lambda i: (0, 0, 0, 0)),
            compiler_params=pltpu.CompilerParams(
                dimension_semantics=("arbitrary",),
                vmem_limit_bytes=_vmem_limit_bytes()),
        )(segs, wdft, avg, interp, x2, mf, mi)

    # -- forward --
    def __call__(self, X, state):
        state = jnp.concatenate([state, X], axis=-1)
        bg = state[0, :, :self.psd_size]               # batch element 0 only (matches spec)
        Xr = state[:, :, self.psd_size:]
        Xu = self._fused(bg, Xr)                       # (B, nw, C, kernel_size)
        Xout = Xu.reshape(-1, self.num_channels, self.kernel_size)
        return Xout, state[:, :, -self.state_size:]


# ---------------------------------- main ------------------------------------

if __name__ == "__main__":
    num_channels = 2
    sample_rate = 128.0
    gen = BatchGenerator(
        num_channels=num_channels,
        kernel_length=1.0,             # kernel_size = 128 (lane-aligned output windows)
        fduration=0.25,                # fsize = 32
        psd_length=2.0,                # psd_size = 256
        inference_sampling_rate=16.0,  # step_size = 8
        sample_rate=sample_rate,
    )

    key = jax.random.PRNGKey(0)
    k1, k2 = jax.random.split(key)
    update_size = 4 * gen.step_size                     # 32 new samples -> 4 windows
    X = jax.random.normal(k1, (2, num_channels, update_size), jnp.float32)
    # randomly-filled state (instead of all-zero initial state) so the PSD is nonzero
    state = jax.random.normal(k2, (2, num_channels, gen.state_size), jnp.float32)

    out, new_state = jax.jit(gen.__call__)(X, state)
    jax.block_until_ready((out, new_state))

    assert out.shape == (2 * 4, num_channels, gen.kernel_size), out.shape
    assert new_state.shape == (2, num_channels, gen.state_size), new_state.shape
    assert bool(jnp.all(jnp.isfinite(out)))
    print("KERNEL_OK")
</pallas_src>

<mosaic_0001>
module attributes {stable_mosaic.version = 11 : i64} {
  func.func @_fused_kernel(%arg0: i32, %arg1: memref<30x32xf32, #tpu.memory_space<vmem>>, %arg2: memref<32x256xbf16, #tpu.memory_space<vmem>>, %arg3: memref<2x30xf32, #tpu.memory_space<vmem>>, %arg4: memref<128x128xf32, #tpu.memory_space<vmem>>, %arg5: memref<4x184xf32, #tpu.memory_space<vmem>>, %arg6: memref<184x256xbf16, #tpu.memory_space<vmem>>, %arg7: memref<256x152xbf16, #tpu.memory_space<vmem>>, %arg8: memref<2x4x2x128xf32, #tpu.memory_space<vmem>>) attributes {dimension_semantics = [#tpu.dimension_semantics<arbitrary>], iteration_bounds = array<i64: 1>, scalar_prefetch = 0 : i64, scratch_operands = 0 : i64, tpu.core_type = #tpu.core_type<tc>, window_params = [{pipeline_mode = #tpu.pipeline_mode<synchronous>, transform_indices = @transform_0, window_bounds = array<i64: 30, 32>}, {pipeline_mode = #tpu.pipeline_mode<synchronous>, transform_indices = @transform_1, window_bounds = array<i64: 32, 256>}, {pipeline_mode = #tpu.pipeline_mode<synchronous>, transform_indices = @transform_2, window_bounds = array<i64: 2, 30>}, {pipeline_mode = #tpu.pipeline_mode<synchronous>, transform_indices = @transform_3, window_bounds = array<i64: 128, 128>}, {pipeline_mode = #tpu.pipeline_mode<synchronous>, transform_indices = @transform_4, window_bounds = array<i64: 4, 184>}, {pipeline_mode = #tpu.pipeline_mode<synchronous>, transform_indices = @transform_5, window_bounds = array<i64: 184, 256>}, {pipeline_mode = #tpu.pipeline_mode<synchronous>, transform_indices = @transform_6, window_bounds = array<i64: 256, 152>}, {pipeline_mode = #tpu.pipeline_mode<synchronous>, transform_indices = @transform_7, window_bounds = array<i64: 2, 4, 2, 128>}]} {
    %c0 = arith.constant 0 : index
    %c0_0 = arith.constant 0 : index
    %0 = vector.load %arg1[%c0, %c0_0] : memref<30x32xf32, #tpu.memory_space<vmem>>, vector<30x32xf32>
    %1 = arith.truncf %0 : vector<30x32xf32> to vector<30x32xbf16>
    %c0_1 = arith.constant 0 : index
    %c0_2 = arith.constant 0 : index
    %2 = vector.load %arg2[%c0_1, %c0_2] : memref<32x256xbf16, #tpu.memory_space<vmem>>, vector<32x256xbf16>
    %cst = arith.constant dense<0.000000e+00> : vector<30x256xf32>
    %3 = tpu.matmul %1, %2, %cst {dimension_numbers = #tpu.dot_dimension_numbers<[1], [0], [0], [1], [0, 0, 1, 1], [], []>} : vector<30x32xbf16>, vector<32x256xbf16>, vector<30x256xf32> -> vector<30x256xf32>
    %4 = vector.extract_strided_slice %3 {offsets = [0, 0], sizes = [30, 128], strides = [1, 1]} : vector<30x256xf32> to vector<30x128xf32>
    %5 = arith.mulf %4, %4 : vector<30x128xf32>
    %6 = vector.extract_strided_slice %3 {offsets = [0, 128], sizes = [30, 128], strides = [1, 1]} : vector<30x256xf32> to vector<30x128xf32>
    %7 = arith.mulf %6, %6 : vector<30x128xf32>
    %8 = arith.addf %5, %7 : vector<30x128xf32>
    %c0_3 = arith.constant 0 : index
    %c0_4 = arith.constant 0 : index
    %9 = vector.load %arg3[%c0_3, %c0_4] : memref<2x30xf32, #tpu.memory_space<vmem>>, vector<2x30xf32>
    %cst_5 = arith.constant dense<0.000000e+00> : vector<2x128xf32>
    %10 = tpu.matmul %9, %8, %cst_5 {dimension_numbers = #tpu.dot_dimension_numbers<[1], [0], [0], [1], [0, 0, 1, 1], [], []>} : vector<2x30xf32>, vector<30x128xf32>, vector<2x128xf32> -> vector<2x128xf32>
    %c0_6 = arith.constant 0 : index
    %c0_7 = arith.constant 0 : index
    %11 = vector.load %arg4[%c0_6, %c0_7] : memref<128x128xf32, #tpu.memory_space<vmem>>, vector<128x128xf32>
    %cst_8 = arith.constant dense<0.000000e+00> : vector<2x128xf32>
    %12 = tpu.matmul %10, %11, %cst_8 {dimension_numbers = #tpu.dot_dimension_numbers<[1], [0], [0], [1], [0, 0, 1, 1], [], []>} : vector<2x128xf32>, vector<128x128xf32>, vector<2x128xf32> -> vector<2x128xf32>
    %cst_9 = arith.constant 9.99999968E-21 : f32
    %13 = vector.broadcast %cst_9 : f32 to vector<2x128xf32>
    %14 = arith.addf %12, %13 : vector<2x128xf32>
    %15 = math.rsqrt %14 : vector<2x128xf32>
    %16 = tpu.concatenate %15, %15 in 1 : vector<2x128xf32>, vector<2x128xf32> -> vector<2x256xf32>
    %17 = tpu.concatenate %16, %16 in 0 : vector<2x256xf32>, vector<2x256xf32> -> vector<4x256xf32>
    %c0_10 = arith.constant 0 : index
    %c0_11 = arith.constant 0 : index
    %18 = vector.load %arg5[%c0_10, %c0_11] : memref<4x184xf32, #tpu.memory_space<vmem>>, vector<4x184xf32>
    %19 = arith.truncf %18 : vector<4x184xf32> to vector<4x184xbf16>
    %c0_12 = arith.constant 0 : index
    %c0_13 = arith.constant 0 : index
    %20 = vector.load %arg6[%c0_12, %c0_13] : memref<184x256xbf16, #tpu.memory_space<vmem>>, vector<184x256xbf16>
    %cst_14 = arith.constant dense<0.000000e+00> : vector<4x256xf32>
    %21 = tpu.matmul %19, %20, %cst_14 {dimension_numbers = #tpu.dot_dimension_numbers<[1], [0], [0], [1], [0, 0, 1, 1], [], []>} : vector<4x184xbf16>, vector<184x256xbf16>, vector<4x256xf32> -> vector<4x256xf32>
    %22 = arith.mulf %21, %17 : vector<4x256xf32>
    %23 = arith.truncf %22 : vector<4x256xf32> to vector<4x256xbf16>
    %c0_15 = arith.constant 0 : index
    %c0_16 = arith.constant 0 : index
    %24 = vector.load %arg7[%c0_15, %c0_16] : memref<256x152xbf16, #tpu.memory_space<vmem>>, vector<256x152xbf16>
    %cst_17 = arith.constant dense<0.000000e+00> : vector<4x152xf32>
    %25 = tpu.matmul %23, %24, %cst_17 {dimension_numbers = #tpu.dot_dimension_numbers<[1], [0], [0], [1], [0, 0, 1, 1], [], []>} : vector<4x256xbf16>, vector<256x152xbf16>, vector<4x152xf32> -> vector<4x152xf32>
    %26 = vector.extract_strided_slice %25 {offsets = [0, 0], sizes = [2, 152], strides = [1, 1]} : vector<4x152xf32> to vector<2x152xf32>
    %27 = vector.extract_strided_slice %26 {offsets = [0, 0], sizes = [2, 128], strides = [1, 1]} : vector<2x152xf32> to vector<2x128xf32>
    %c0_18 = arith.constant 0 : index
    %c0_19 = arith.constant 0 : index
    %c0_20 = arith.constant 0 : index
    %c0_21 = arith.constant 0 : index
    %28 = vector.load %arg8[%c0_18, %c0_19, %c0_20, %c0_21] : memref<2x4x2x128xf32, #tpu.memory_space<vmem>>, vector<1x1x2x128xf32>
    %29 = vector.shape_cast %28 : vector<1x1x2x128xf32> to vector<2x128xf32>
    %30 = vector.shape_cast %27 : vector<2x128xf32> to vector<1x1x2x128xf32>
    tpu.vector_store %arg8[%c0_18, %c0_19, %c0_20, %c0_21], %30 {strides = array<i32>} : memref<2x4x2x128xf32, #tpu.memory_space<vmem>>, vector<1x1x2x128xf32>,
    %31 = vector.extract_strided_slice %26 {offsets = [0, 8], sizes = [2, 128], strides = [1, 1]} : vector<2x152xf32> to vector<2x128xf32>
    %c0_22 = arith.constant 0 : index
    %c1 = arith.constant 1 : index
    %c0_23 = arith.constant 0 : index
    %c0_24 = arith.constant 0 : index
    %32 = vector.load %arg8[%c0_22, %c1, %c0_23, %c0_24] : memref<2x4x2x128xf32, #tpu.memory_space<vmem>>, vector<1x1x2x128xf32>
    %33 = vector.shape_cast %32 : vector<1x1x2x128xf32> to vector<2x128xf32>
    %34 = vector.shape_cast %31 : vector<2x128xf32> to vector<1x1x2x128xf32>
    tpu.vector_store %arg8[%c0_22, %c1, %c0_23, %c0_24], %34 {strides = array<i32>} : memref<2x4x2x128xf32, #tpu.memory_space<vmem>>, vector<1x1x2x128xf32>,
    %35 = vector.extract_strided_slice %26 {offsets = [0, 16], sizes = [2, 128], strides = [1, 1]} : vector<2x152xf32> to vector<2x128xf32>
    %c0_25 = arith.constant 0 : index
    %c2 = arith.constant 2 : index
    %c0_26 = arith.constant 0 : index
    %c0_27 = arith.constant 0 : index
    %36 = vector.load %arg8[%c0_25, %c2, %c0_26, %c0_27] : memref<2x4x2x128xf32, #tpu.memory_space<vmem>>, vector<1x1x2x128xf32>
    %37 = vector.shape_cast %36 : vector<1x1x2x128xf32> to vector<2x128xf32>
    %38 = vector.shape_cast %35 : vector<2x128xf32> to vector<1x1x2x128xf32>
    tpu.vector_store %arg8[%c0_25, %c2, %c0_26, %c0_27], %38 {strides = array<i32>} : memref<2x4x2x128xf32, #tpu.memory_space<vmem>>, vector<1x1x2x128xf32>,
    %39 = vector.extract_strided_slice %26 {offsets = [0, 24], sizes = [2, 128], strides = [1, 1]} : vector<2x152xf32> to vector<2x128xf32>
    %c0_28 = arith.constant 0 : index
    %c3 = arith.constant 3 : index
    %c0_29 = arith.constant 0 : index
    %c0_30 = arith.constant 0 : index
    %40 = vector.load %arg8[%c0_28, %c3, %c0_29, %c0_30] : memref<2x4x2x128xf32, #tpu.memory_space<vmem>>, vector<1x1x2x128xf32>
    %41 = vector.shape_cast %40 : vector<1x1x2x128xf32> to vector<2x128xf32>
    %42 = vector.shape_cast %39 : vector<2x128xf32> to vector<1x1x2x128xf32>
    tpu.vector_store %arg8[%c0_28, %c3, %c0_29, %c0_30], %42 {strides = array<i32>} : memref<2x4x2x128xf32, #tpu.memory_space<vmem>>, vector<1x1x2x128xf32>,
    %43 = vector.extract_strided_slice %25 {offsets = [2, 0], sizes = [2, 152], strides = [1, 1]} : vector<4x152xf32> to vector<2x152xf32>
    %44 = vector.extract_strided_slice %43 {offsets = [0, 0], sizes = [2, 128], strides = [1, 1]} : vector<2x152xf32> to vector<2x128xf32>
    %c1_31 = arith.constant 1 : index
    %c0_32 = arith.constant 0 : index
    %c0_33 = arith.constant 0 : index
    %c0_34 = arith.constant 0 : index
    %45 = vector.load %arg8[%c1_31, %c0_32, %c0_33, %c0_34] : memref<2x4x2x128xf32, #tpu.memory_space<vmem>>, vector<1x1x2x128xf32>
    %46 = vector.shape_cast %45 : vector<1x1x2x128xf32> to vector<2x128xf32>
    %47 = vector.shape_cast %44 : vector<2x128xf32> to vector<1x1x2x128xf32>
    tpu.vector_store %arg8[%c1_31, %c0_32, %c0_33, %c0_34], %47 {strides = array<i32>} : memref<2x4x2x128xf32, #tpu.memory_space<vmem>>, vector<1x1x2x128xf32>,
    %48 = vector.extract_strided_slice %43 {offsets = [0, 8], sizes = [2, 128], strides = [1, 1]} : vector<2x152xf32> to vector<2x128xf32>
    %c1_35 = arith.constant 1 : index
    %c1_36 = arith.constant 1 : index
    %c0_37 = arith.constant 0 : index
    %c0_38 = arith.constant 0 : index
    %49 = vector.load %arg8[%c1_35, %c1_36, %c0_37, %c0_38] : memref<2x4x2x128xf32, #tpu.memory_space<vmem>>, vector<1x1x2x128xf32>
    %50 = vector.shape_cast %49 : vector<1x1x2x128xf32> to vector<2x128xf32>
    %51 = vector.shape_cast %48 : vector<2x128xf32> to vector<1x1x2x128xf32>
    tpu.vector_store %arg8[%c1_35, %c1_36, %c0_37, %c0_38], %51 {strides = array<i32>} : memref<2x4x2x128xf32, #tpu.memory_space<vmem>>, vector<1x1x2x128xf32>,
    %52 = vector.extract_strided_slice %43 {offsets = [0, 16], sizes = [2, 128], strides = [1, 1]} : vector<2x152xf32> to vector<2x128xf32>
    %c1_39 = arith.constant 1 : index
    %c2_40 = arith.constant 2 : index
    %c0_41 = arith.constant 0 : index
    %c0_42 = arith.constant 0 : index
    %53 = vector.load %arg8[%c1_39, %c2_40, %c0_41, %c0_42] : memref<2x4x2x128xf32, #tpu.memory_space<vmem>>, vector<1x1x2x128xf32>
    %54 = vector.shape_cast %53 : vector<1x1x2x128xf32> to vector<2x128xf32>
    %55 = vector.shape_cast %52 : vector<2x128xf32> to vector<1x1x2x128xf32>
    tpu.vector_store %arg8[%c1_39, %c2_40, %c0_41, %c0_42], %55 {strides = array<i32>} : memref<2x4x2x128xf32, #tpu.memory_space<vmem>>, vector<1x1x2x128xf32>,
    %56 = vector.extract_strided_slice %43 {offsets = [0, 24], sizes = [2, 128], strides = [1, 1]} : vector<2x152xf32> to vector<2x128xf32>
    %c1_43 = arith.constant 1 : index
    %c3_44 = arith.constant 3 : index
    %c0_45 = arith.constant 0 : index
    %c0_46 = arith.constant 0 : index
    %57 = vector.load %arg8[%c1_43, %c3_44, %c0_45, %c0_46] : memref<2x4x2x128xf32, #tpu.memory_space<vmem>>, vector<1x1x2x128xf32>
    %58 = vector.shape_cast %57 : vector<1x1x2x128xf32> to vector<2x128xf32>
    %59 = vector.shape_cast %56 : vector<2x128xf32> to vector<1x1x2x128xf32>
    tpu.vector_store %arg8[%c1_43, %c3_44, %c0_45, %c0_46], %59 {strides = array<i32>} : memref<2x4x2x128xf32, #tpu.memory_space<vmem>>, vector<1x1x2x128xf32>,
    return
  }
  func.func @transform_0(%arg0: i32) -> (i32, i32) {
    %c0_i32 = arith.constant 0 : i32
    %c0_i32_0 = arith.constant 0 : i32
    %c0_i32_1 = arith.constant 0 : i32
    return %c0_i32, %c0_i32_0 : i32, i32
  }
  func.func @transform_1(%arg0: i32) -> (i32, i32) {
    %c0_i32 = arith.constant 0 : i32
    %c0_i32_0 = arith.constant 0 : i32
    %c0_i32_1 = arith.constant 0 : i32
    return %c0_i32, %c0_i32_0 : i32, i32
  }
  func.func @transform_2(%arg0: i32) -> (i32, i32) {
    %c0_i32 = arith.constant 0 : i32
    %c0_i32_0 = arith.constant 0 : i32
    %c0_i32_1 = arith.constant 0 : i32
    return %c0_i32, %c0_i32_0 : i32, i32
  }
  func.func @transform_3(%arg0: i32) -> (i32, i32) {
    %c0_i32 = arith.constant 0 : i32
    %c0_i32_0 = arith.constant 0 : i32
    %c0_i32_1 = arith.constant 0 : i32
    return %c0_i32, %c0_i32_0 : i32, i32
  }
  func.func @transform_4(%arg0: i32) -> (i32, i32) {
    %c0_i32 = arith.constant 0 : i32
    %c0_i32_0 = arith.constant 0 : i32
    %c0_i32_1 = arith.constant 0 : i32
    return %c0_i32, %c0_i32_0 : i32, i32
  }
  func.func @transform_5(%arg0: i32) -> (i32, i32) {
    %c0_i32 = arith.constant 0 : i32
    %c0_i32_0 = arith.constant 0 : i32
    %c0_i32_1 = arith.constant 0 : i32
    return %c0_i32, %c0_i32_0 : i32, i32
  }
  func.func @transform_6(%arg0: i32) -> (i32, i32) {
    %c0_i32 = arith.constant 0 : i32
    %c0_i32_0 = arith.constant 0 : i32
    %c0_i32_1 = arith.constant 0 : i32
    return %c0_i32, %c0_i32_0 : i32, i32
  }
  func.func @transform_7(%arg0: i32) -> (i32, i32, i32, i32) {
    %c0_i32 = arith.constant 0 : i32
    %c0_i32_0 = arith.constant 0 : i32
    %c0_i32_1 = arith.constant 0 : i32
    %c0_i32_2 = arith.constant 0 : i32
    %c0_i32_3 = arith.constant 0 : i32
    return %c0_i32, %c0_i32_0, %c0_i32_1, %c0_i32_2 : i32, i32, i32, i32
  }
}

</mosaic_0001>

<bundles_post_ra>
// kernel: a_call__.1
= control target key start
LH: loop header
LB: loop body
LE: loop exit
PB: predicated region body
PF: predicated region fallthrough
CT: control target
= control target key end

     0   :  { %v1080_v2 = vmov 0   ;;  %vm58_vm0 = vcmask 261120   ;;  %s1398_s0 = inlined_call_operand.vmem [shape: f32[30,32], index: 0, kind: input, shape index: {}]   ;;  %s1399_s1 = inlined_call_operand.vmem [shape: bf16[32,256], index: 1, kind: input, shape index: {}]   ;;  %s1400_s2 = inlined_call_operand.vmem [shape: f32[2,30], index: 2, kind: input, shape index: {}]   ;;  %s1401_s3 = inlined_call_operand.vmem [shape: f32[128,128], index: 3, kind: input, shape index: {}]   ;;  %s1402_s4 = inlined_call_operand.vmem [shape: f32[4,184], index: 4, kind: input, shape index: {}]   ;;  %s1403_s5 = inlined_call_operand.vmem [shape: bf16[184,256], index: 5, kind: input, shape index: {}]   ;;  %s1404_s6 = inlined_call_operand.vmem [shape: bf16[256,152], index: 6, kind: input, shape index: {}]   ;;  %s1405_s7 = inlined_call_operand.hbm [shape: f32[2,4,2,128], index: 7, kind: output, shape index: {}]  }
   0x1   :  { %v964_v0 = vld [vmem:[%s1399_s1 + $0x4] ss:$8 sps:$4 sm:$0xff]   ;;  %v966_v1 = vld [vmem:[%s1399_s1] ss:$8 sps:$4 sm:$0xff]   ;;  %97 = vmatprep.mubr.bf16.mxu0 %v1080_v2  ;;  %v967_v3 = vld [vmem:[%s1399_s1 + $0x14] ss:$8 sps:$4 sm:$0xff]  }
   0x2   :  { %65 = vmatprep.subr.bf16.mxu0 %v964_v0  ;;  %v969_v4 = vld [vmem:[%s1399_s1 + $0x10] ss:$8 sps:$4 sm:$0xff]   ;;  %v28_v5 = vld [vmem:[%s1398_s0] sm:$0xff]  ;;  %v29_v6 = vld [vmem:[%s1398_s0 + $0x8] sm:$0xff] }
   0x3   :  { %66 = vmatpush1.bf16.msra.mxu0 %v966_v1  ;;  %v32_v7 = vpack.c.bf16 %v29_v6, %v28_v5  ;;  %v30_v8 = vld [vmem:[%s1398_s0 + $0x10] sm:$0xff]  ;;  %v31_v9 = vld [vmem:[%s1398_s0 + $0x18] sm:$0x3f] }
   0x4   :  { %67 = vmatprep.subr.bf16.mxu0 %v967_v3  ;;  %v33_v10 = vpack.c.bf16 %v31_v9, %v30_v8 }
   0x7   :  { %68 = vmatpush1.bf16.msra.mxu0 %v969_v4 }
   0xa   :  { %792 = vmatmul.mubr.msk.bf16.vlgmr.msra.gmra.mrb[0].mxu0 %vm58_vm0, %v32_v7 }
   0xb   :  { %107 = vmatprep.mubr.bf16.mxu0 %v1080_v2 }
  0x12   :  { %793 = vmatmul.mubr.msk.bf16.gmra.mrb[4].mxu0 %vm58_vm0, %v33_v10 }
  0x13   :  { %12 = vsyncpa [#allocation3], 0  ;;  %v1081_v11 = vmov 0.0|0.0   ;;  %vm1082_vm1 = vmmov 0   ;;  %v1083_v12 = vmov 0.0   ;;  %vm135_vm2 = vcmask 1045504  }
  0x14   :  { %922 = vmatprep.subr.bf16.mxu1 %v1081_v11  ;;  %884 = vmatprep.mubr.msk.f32.mxu1 %vm1082_vm1, %v1083_v12  ;;  %vm1084_vm3 = vmmov 1   ;;  %v209_v34 = vld [vmem:[%s1401_s3] sm:$0xff]  ;;  %v210_v35 = vld [vmem:[%s1401_s3 + $0x8] sm:$0xff]  ;;  %vm131_vm5 = vcmask 244736   ;;  %v211_v39 = vld [vmem:[%s1401_s3 + $0x10] sm:$0xff]  ;;  %vm445_vm6 = vcmask 457728  }
  0x15   :  { %vm927_vm4 = vmpackc.low %vm135_vm2, %vm1084_vm3  ;;  %v130_v37 = vld [vmem:[%s1400_s2] sm:$0x3]  ;;  %v930_v38 = vpack.c.bf16 %v210_v35, %v209_v34  ;;  %v212_v40 = vld [vmem:[%s1401_s3 + $0x18] sm:$0xff]  ;;  %vm449_vm7 = vcmask 1043456   ;;  %vm299_vm8 = vcmask 1041408   ;;  %s1086_s21 = smov 120  }
  0x16   :  { %v933_v41 = vpack.c.bf16 %v212_v40, %v211_v39  ;;  %v213_v42 = vld [vmem:[%s1401_s3 + $0x20] sm:$0xff]  ;;  %v214_v43 = vld [vmem:[%s1401_s3 + $0x28] sm:$0xff]  ;;  %v215_v45 = vld [vmem:[%s1401_s3 + $0x30] sm:$0xff]  ;;  %s1087_s22 = smov 104   ;;  %vm750_vm9 = vcmask 916480   ;;  %vm741_vm10 = vcmask 982016  }
  0x17   :  { %v936_v44 = vpack.c.bf16 %v214_v43, %v213_v42  ;;  %v216_v46 = vld [vmem:[%s1401_s3 + $0x38] sm:$0xff]  ;;  %v217_v48 = vld [vmem:[%s1401_s3 + $0x40] sm:$0xff]  ;;  %v218_v49 = vld [vmem:[%s1401_s3 + $0x48] sm:$0xff]  ;;  %s1088_s23 = smov [#allocation2]   ;;  %vm759_vm11 = vcmask 850944  }
  0x18   :  { %v939_v47 = vpack.c.bf16 %v216_v46, %v215_v45  ;;  %v942_v50 = vpack.c.bf16 %v218_v49, %v217_v48  ;;  %v219_v51 = vld [vmem:[%s1401_s3 + $0x50] sm:$0xff]  ;;  %v220_v52 = vld [vmem:[%s1401_s3 + $0x58] sm:$0xff]  ;;  %v221_v54 = vld [vmem:[%s1401_s3 + $0x60] sm:$0xff]  ;;  %s777_s24 = sshll.u32 %s1088_s23, 4  ;;  %s778_s24 = int_to_ptr.vmem [resolvable:$true] %s777_s24 }
  0x19   :  { %v945_v53 = vpack.c.bf16 %v220_v52, %v219_v51  ;;  %v222_v55 = vld [vmem:[%s1401_s3 + $0x68] sm:$0xff]  ;;  %v223_v57 = vld [vmem:[%s1401_s3 + $0x70] sm:$0xff]  ;;  %v224_v58 = vld [vmem:[%s1401_s3 + $0x78] sm:$0xff]  ;;  %s1056_s2 = scalar_lea.vmem %s778_s24, 256  ;;  %p1061_p1 = scmp.lt.s32.totalorder %s778_s24, %s778_s24 }
  0x1a   :  { %v948_v56 = vpack.c.bf16 %v222_v55, %v221_v54  ;;  %v951_v59 = vpack.c.bf16 %v224_v58, %v223_v57  ;;  %v972_v60 = vld [vmem:[%s1403_s5 + $0x4] ss:$8 sps:$4 sm:$0xff]   ;;  %v1006_v61 = vld [vmem:[%s1404_s6] ss:$8 sps:$4 sm:$0xff]   ;;  %v1011_v63 = vld [vmem:[%s1404_s6 + $0x14] ss:$8 sps:$4 sm:$0xff]   ;;  %p1057_p0 = scmp.ne.s32.totalorder %s778_s24, %s1056_s2  ;;  %p1062_p2 = scmp.lt.s32.totalorder %s1056_s2, %s1056_s2 }
  0x1b   :  { %v1008_v62 = vld [vmem:[%s1404_s6 + $0x4] ss:$8 sps:$4 sm:$0xff]   ;;  %v1009_v0 = vld [vmem:[%s1404_s6 + $0x10] ss:$8 sps:$4 sm:$0xff]   ;;  %v1012_v2 = vld [vmem:[%s1404_s6 + $0x20] ss:$8 sps:$4 sm:$0xff]  }
  0x1c   :  { %693 = vmatprep.subr.bf16.mxu0 %v1008_v62  ;;  %v1014_v1 = vld [vmem:[%s1404_s6 + $0x24] ss:$8 sps:$4 sm:$0xff]   ;;  %v970_v5 = vld [vmem:[%s1403_s5] ss:$8 sps:$4 sm:$0xff]   ;;  %v975_v7 = vld [vmem:[%s1403_s5 + $0x14] ss:$8 sps:$4 sm:$0xff]   ;;  %p1063_p3 = por %p1062_p2, %p1061_p1 }
  0x1d   :  { %694 = vmatpush1.bf16.msra.mxu0 %v1006_v61  ;;  %v301_v3 = vld [vmem:[%s1402_s4] sm:$0xff]  ;;  %v973_v10 = vld [vmem:[%s1403_s5 + $0x10] ss:$8 sps:$4 sm:$0xff]   ;;  %v1017_v34 = vld [vmem:[%s1404_s6 + $0x34] ss:$8 sps:$4 sm:$0xff]  }
  0x1e   :  { %695 = vmatprep.subr.bf16.mxu0 %v1011_v63  ;;  %v303_v4 = vcombine.high %v301_v3, %v301_v3  ;;  %v1015_v35 = vld [vmem:[%s1404_s6 + $0x30] ss:$8 sps:$4 sm:$0xff]   ;;  %v1026_v40 = vld [vmem:[%s1404_s6 + $0x64] ss:$8 sps:$4 sm:$0xff]   ;;  %v1029_v42 = vld [vmem:[%s1404_s6 + $0x74] ss:$8 sps:$4 sm:$0xff]   ;;  %p1064_p4 = pnand %p1063_p3, %p1057_p0 }
  0x1f   :  { %v1021_v39 = vld [vmem:[%s1404_s6 + $0x50] ss:$8 sps:$4 sm:$0xff]   ;;  %v1030_v45 = vld [vmem:[%s1404_s6 + $0x80] ss:$8 sps:$4 sm:$0xff]   ;;  %v1035_v46 = vld [vmem:[%s1404_s6 + $0x94] ss:$8 sps:$4 sm:$0xff]  }
  0x20   :  { %v306_v6 = vpack.c.bf16 %v303_v4, %v303_v4  ;;  %v1027_v43 = vld [vmem:[%s1404_s6 + $0x70] ss:$8 sps:$4 sm:$0xff]   ;;  %v1038_v48 = vld [vmem:[%s1404_s6 + $0xa4] ss:$8 sps:$4 sm:$0xff]   ;;  %v1036_v49 = vld [vmem:[%s1404_s6 + $0xa0] ss:$8 sps:$4 sm:$0xff]  }
  0x21   :  { %696 = vmatpush1.bf16.msra.mxu0 %v1009_v0  ;;  %v1039_v51 = vld [vmem:[%s1404_s6 + $0xb0] ss:$8 sps:$4 sm:$0xff]   ;;  %v1044_v52 = vld [vmem:[%s1404_s6 + $0xc4] ss:$8 sps:$4 sm:$0xff]   ;;  %v1047_v54 = vld [vmem:[%s1404_s6 + $0xd4] ss:$8 sps:$4 sm:$0xff]  }
  0x22   :  { %697 = vmatprep.subr.bf16.mxu0 %v1014_v1  ;;  %v1045_v55 = vld [vmem:[%s1404_s6 + $0xd0] ss:$8 sps:$4 sm:$0xff]   ;;  %v1048_v57 = vld [vmem:[%s1404_s6 + $0xe0] ss:$8 sps:$4 sm:$0xff]   ;;  %v1053_v58 = vld [vmem:[%s1404_s6 + $0xf4] ss:$8 sps:$4 sm:$0xff]  }
  0x25   :  { %698 = vmatpush1.bf16.msra.mxu0 %v1012_v2 }
  0x26   :  { %699 = vmatprep.subr.bf16.mxu0 %v1017_v34 }
  0x29   :  { %700 = vmatpush1.bf16.msra.mxu0 %v1015_v35 }
  0xdd   :  { %v99_v13 = vpop.f32.mrb[0].mxu0 }
  0xde   :  { %v118_v14 = vmul.f32 %v99_v13, %v99_v13  ;;  %v101_v15 = vpop.f32.mrb[1].mxu0  ;;  %v981_v13 = vld [vmem:[%s1403_s5 + $0x34] ss:$8 sps:$4 sm:$0xff]  }
  0xdf   :  { %v122_v16 = vmul.f32 %v101_v15, %v101_v15  ;;  %v103_v17 = vpop.f32.mrb[2].mxu0  ;;  %v984_v15 = vld [vmem:[%s1403_s5 + $0x44] ss:$8 sps:$4 sm:$0xff]  }
  0xe0   :  { %v119_v18 = vmul.f32 %v103_v17, %v103_v17  ;;  %v105_v19 = vpop.f32.mrb[3].mxu0  ;;  %v987_v17 = vld [vmem:[%s1403_s5 + $0x54] ss:$8 sps:$4 sm:$0xff]  }
  0xe1   :  { %v126_v20 = vadd.f32 %v122_v16, %v118_v14  ;;  %v123_v21 = vmul.f32 %v105_v19, %v105_v19  ;;  %v979_v14 = vld [vmem:[%s1403_s5 + $0x30] ss:$8 sps:$4 sm:$0xff]   ;;  %v982_v16 = vld [vmem:[%s1403_s5 + $0x40] ss:$8 sps:$4 sm:$0xff]   ;;  %v990_v19 = vld [vmem:[%s1403_s5 + $0x64] ss:$8 sps:$4 sm:$0xff]  }
  0xe3   :  { %v127_v22 = vadd.f32 %v123_v21, %v119_v18  ;;  %v985_v18 = vld [vmem:[%s1403_s5 + $0x50] ss:$8 sps:$4 sm:$0xff]   ;;  %v993_v21 = vld [vmem:[%s1403_s5 + $0x74] ss:$8 sps:$4 sm:$0xff]  }
  0xe5   :  { %v109_v23 = vpop.f32.mrb[4].mxu0  ;;  %v923_v24 = vpack.c.bf16 %v127_v22, %v126_v20  ;;  %v988_v20 = vld [vmem:[%s1403_s5 + $0x60] ss:$8 sps:$4 sm:$0xff]   ;;  %v991_v22 = vld [vmem:[%s1403_s5 + $0x70] ss:$8 sps:$4 sm:$0xff]  }
  0xe6   :  { %v120_v25 = vmul.f32 %v109_v23, %v109_v23  ;;  %v111_v26 = vpop.f32.mrb[5].mxu0  ;;  %v996_v23 = vld [vmem:[%s1403_s5 + $0x84] ss:$8 sps:$4 sm:$0xff]  }
  0xe7   :  { %v124_v27 = vmul.f32 %v111_v26, %v111_v26  ;;  %v113_v28 = vpop.f32.mrb[6].mxu0  ;;  %924 = vmatpush3.bf16.msra.mxu1 %v923_v24  ;;  %v994_v24 = vld [vmem:[%s1403_s5 + $0x80] ss:$8 sps:$4 sm:$0xff]   ;;  %v997_v26 = vld [vmem:[%s1403_s5 + $0x90] ss:$8 sps:$4 sm:$0xff]  }
  0xe8   :  { %v121_v29 = vmul.f32 %v113_v28, %v113_v28  ;;  %v115_v30 = vpop.f32.mrb[7].mxu0  ;;  %925 = vmatprep.subr.bf16.mxu1 %v1081_v11  ;;  %v329_v28 = vld [vmem:[%s1403_s5 + $0xb0] sm:$0xff] }
  0xe9   :  { %v128_v31 = vadd.f32 %v124_v27, %v120_v25  ;;  %v125_v32 = vmul.f32 %v115_v30, %v115_v30  ;;  %v999_v25 = vld [vmem:[%s1403_s5 + $0x94] ss:$8 sps:$4 sm:$0xff]   ;;  %v1002_v27 = vld [vmem:[%s1403_s5 + $0xa4] ss:$8 sps:$4 sm:$0xff]   ;;  %v819_v30 = vcombine.high %v329_v28, %v329_v28 }
  0xeb   :  { %v129_v33 = vadd.f32 %v125_v32, %v121_v29  ;;  %v1000_v29 = vld [vmem:[%s1403_s5 + $0xa0] ss:$8 sps:$4 sm:$0xff]  }
  0xed   :  { %v926_v36 = vpack.c.bf16 %v129_v33, %v128_v31  ;;  %v818_v31 = vcombine.low %v329_v28, %v329_v28  ;;  %v305_v33 = vpack.c.bf16 %v301_v3, %v301_v3 }
  0xef   :  { %928 = vmatpush3.bf16.msk.msra.mxu1 %vm927_vm4, %v926_v36  ;;  %v451_v32 = vsel %vm449_vm7, %v818_v31, 0  ;;  %v1020_v36 = vld [vmem:[%s1404_s6 + $0x44] ss:$8 sps:$4 sm:$0xff]  }
  0xf0   :  { %929 = vmatprep.subr.bf16.mxu1 %v1081_v11  ;;  %701 = vmatprep.subr.bf16.mxu0 %v1020_v36 }
  0xf2   :  { %885 = vmatmul.mubr.msk.f32.vlgmr.msra.gmra.mrb[0].mxu1 %vm131_vm5, %v130_v37  ;;  %v1018_v37 = vld [vmem:[%s1404_s6 + $0x40] ss:$8 sps:$4 sm:$0xff]  }
  0xf3   :  { %931 = vmatpush3.bf16.msra.mxu1 %v930_v38  ;;  %919 = vmatprep.mubr.msk.f32.mxu1 %vm1082_vm1, %v1083_v12  ;;  %v976_v12 = vld [vmem:[%s1403_s5 + $0x20] ss:$8 sps:$4 sm:$0xff]   ;;  %v1023_v38 = vld [vmem:[%s1404_s6 + $0x54] ss:$8 sps:$4 sm:$0xff]  }
  0xf4   :  { %932 = vmatprep.subr.bf16.mxu1 %v1081_v11  ;;  %702 = vmatpush1.bf16.msra.mxu0 %v1018_v37 }
  0xf5   :  { %703 = vmatprep.subr.bf16.mxu0 %v1023_v38 }
  0xf7   :  { %934 = vmatpush3.bf16.msra.mxu1 %v933_v41  ;;  %v1024_v41 = vld [vmem:[%s1404_s6 + $0x60] ss:$8 sps:$4 sm:$0xff]  }
  0xf8   :  { %935 = vmatprep.subr.bf16.mxu1 %v1081_v11  ;;  %704 = vmatpush1.bf16.msra.mxu0 %v1021_v39 }
  0xf9   :  { %705 = vmatprep.subr.bf16.mxu0 %v1026_v40 }
  0xfb   :  { %937 = vmatpush3.bf16.msra.mxu1 %v936_v44  ;;  %v1032_v44 = vld [vmem:[%s1404_s6 + $0x84] ss:$8 sps:$4 sm:$0xff]  }
  0xfc   :  { %938 = vmatprep.subr.bf16.mxu1 %v1081_v11  ;;  %706 = vmatpush1.bf16.msra.mxu0 %v1024_v41 }
  0xfd   :  { %707 = vmatprep.subr.bf16.mxu0 %v1029_v42 }
  0xff   :  { %940 = vmatpush3.bf16.msra.mxu1 %v939_v47  ;;  %v1033_v47 = vld [vmem:[%s1404_s6 + $0x90] ss:$8 sps:$4 sm:$0xff]  }
 0x100   :  { %941 = vmatprep.subr.bf16.mxu1 %v1081_v11  ;;  %708 = vmatpush1.bf16.msra.mxu0 %v1027_v43 }
 0x101   :  { %709 = vmatprep.subr.bf16.mxu0 %v1032_v44 }
 0x103   :  { %943 = vmatpush3.bf16.msra.mxu1 %v942_v50  ;;  %v1041_v50 = vld [vmem:[%s1404_s6 + $0xb4] ss:$8 sps:$4 sm:$0xff]  }
 0x104   :  { %944 = vmatprep.subr.bf16.mxu1 %v1081_v11  ;;  %710 = vmatpush1.bf16.msra.mxu0 %v1030_v45 }
 0x105   :  { %711 = vmatprep.subr.bf16.mxu0 %v1035_v46 }
 0x107   :  { %946 = vmatpush3.bf16.msra.mxu1 %v945_v53  ;;  %v1042_v53 = vld [vmem:[%s1404_s6 + $0xc0] ss:$8 sps:$4 sm:$0xff]  }
 0x108   :  { %947 = vmatprep.subr.bf16.mxu1 %v1081_v11  ;;  %712 = vmatpush1.bf16.msra.mxu0 %v1033_v47 }
 0x109   :  { %713 = vmatprep.subr.bf16.mxu0 %v1038_v48 }
 0x10b   :  { %949 = vmatpush3.bf16.msra.mxu1 %v948_v56  ;;  %v1050_v56 = vld [vmem:[%s1404_s6 + $0xe4] ss:$8 sps:$4 sm:$0xff]  }
 0x10c   :  { %950 = vmatprep.subr.bf16.mxu1 %v1081_v11  ;;  %v978_v11 = vld [vmem:[%s1403_s5 + $0x24] ss:$8 sps:$4 sm:$0xff]   ;;  %714 = vmatpush1.bf16.msra.mxu0 %v1036_v49 }
 0x10d   :  { %715 = vmatprep.subr.bf16.mxu0 %v1041_v50 }
 0x10f   :  { %952 = vmatpush3.bf16.msra.mxu1 %v951_v59  ;;  %v1051_v59 = vld [vmem:[%s1404_s6 + $0xf0] ss:$8 sps:$4 sm:$0xff]   ;;  %s1085_s6 = smov 112  }
 0x110   :  { %456 = vmatprep.subr.bf16.mxu1 %v972_v60  ;;  %716 = vmatpush1.bf16.msra.mxu0 %v1039_v51 }
 0x111   :  { %717 = vmatprep.subr.bf16.mxu0 %v1044_v52 }
 0x114   :  { %718 = vmatpush1.bf16.msra.mxu0 %v1042_v53 }
 0x115   :  { %719 = vmatprep.subr.bf16.mxu0 %v1047_v54 }
 0x118   :  { %720 = vmatpush1.bf16.msra.mxu0 %v1045_v55 }
 0x119   :  { %721 = vmatprep.subr.bf16.mxu0 %v1050_v56 }
 0x11c   :  { %722 = vmatpush1.bf16.msra.mxu0 %v1048_v57 }
 0x11d   :  { %723 = vmatprep.subr.bf16.mxu0 %v1053_v58 }
 0x120   :  { %724 = vmatpush1.bf16.msra.mxu0 %v1051_v59 }
 0x1c5   :  { %v205_v8 = vpop.f32.mrb[0].mxu1 }
 0x1c6   :  { %v886_v9 = vpop.f32.mrb[1].mxu1  ;;  %920 = vmatmul.mubr.f32.vlgmr.msra.gmra.mrb[2].mxu1 %v205_v8 }
 0x1c7   :  { %457 = vmatpush1.bf16.msra.mxu1 %v970_v5  ;;  %821 = vmatprep.mubr.msk.bf16.mxu1 %vm445_vm6, %v306_v6 }
 0x1c8   :  { %458 = vmatprep.subr.bf16.mxu1 %v975_v7 }
 0x1cb   :  { %459 = vmatpush1.bf16.msra.mxu1 %v973_v10 }
 0x1cc   :  { %460 = vmatprep.subr.bf16.mxu1 %v978_v11 }
 0x1cf   :  { %461 = vmatpush1.bf16.msra.mxu1 %v976_v12 }
 0x1d0   :  { %462 = vmatprep.subr.bf16.mxu1 %v981_v13 }
 0x1d3   :  { %463 = vmatpush1.bf16.msra.mxu1 %v979_v14 }
 0x1d4   :  { %464 = vmatprep.subr.bf16.mxu1 %v984_v15 }
 0x1d7   :  { %465 = vmatpush1.bf16.msra.mxu1 %v982_v16 }
 0x1d8   :  { %466 = vmatprep.subr.bf16.mxu1 %v987_v17 }
 0x1db   :  { %467 = vmatpush1.bf16.msra.mxu1 %v985_v18 }
 0x1dc   :  { %468 = vmatprep.subr.bf16.mxu1 %v990_v19 }
 0x1df   :  { %469 = vmatpush1.bf16.msra.mxu1 %v988_v20 }
 0x1e0   :  { %470 = vmatprep.subr.bf16.mxu1 %v993_v21 }
 0x1e3   :  { %471 = vmatpush1.bf16.msra.mxu1 %v991_v22 }
 0x1e4   :  { %472 = vmatprep.subr.bf16.mxu1 %v996_v23 }
 0x1e7   :  { %473 = vmatpush1.bf16.msra.mxu1 %v994_v24 }
 0x1e8   :  { %474 = vmatprep.subr.bf16.mxu1 %v999_v25 }
 0x1eb   :  { %475 = vmatpush1.bf16.msra.mxu1 %v997_v26 }
 0x1ec   :  { %476 = vmatprep.subr.bf16.mxu1 %v1002_v27 }
 0x1ef   :  { %477 = vmatpush1.bf16.msra.mxu1 %v1000_v29 }
 0x1f0   :  { %820 = vmatprep.subr.msk.bf16.mxu1 %vm449_vm7, %v819_v30 }
 0x1f3   :  { %479 = vmatpush1.bf16.msra.mxu1 %v451_v32 }
 0x1f6   :  { %489 = vmatmul.mubr.bf16.vlgmr.msra.gmra.mrb[4].mxu1 %v305_v33 }
 0x299   :  { %v291_v60 = vpop.f32.mrb[2].mxu1 }
 0x29a   :  { %v921_v61 = vpop.f32.mrb[3].mxu1  ;;  %v292_v62 = vadd.f32 1e-20, %v291_v60 }
 0x29c   :  { %1054 = vrsqrt.f32 %v292_v62 }
 0x2a6   :  { %v1055_v63 = vpop.eup %1054 }
 0x2a7   :  { %v297_v0 = vrot.slane %v1055_v63, 6 }
 0x2a9   :  { %v300_v1 = vsel %vm299_vm8, %v1055_v63, %v297_v0 }
 0x2c9   :  { %v490_v2 = vpop.f32.mrb[4].mxu1 }
 0x2ca   :  { %v497_v3 = vmul.f32 %v490_v2, %v300_v1  ;;  %v492_v4 = vpop.f32.mrb[5].mxu1 }
 0x2cb   :  { %v498_v5 = vmul.f32 %v492_v4, %v300_v1  ;;  %v494_v6 = vpop.f32.mrb[6].mxu1 }
 0x2cc   :  { %v495_v7 = vpop.f32.mrb[7].mxu1  ;;  %v499_v9 = vpack.c.bf16 %v497_v3, %v497_v3 }
 0x2cd   :  { %v500_v8 = vpack.c.bf16 %v498_v5, %v498_v5 }
 0x2cf   :  { %725 = vmatprep.mubr.bf16.mxu0 %v500_v8 }
 0x2d0   :  { %726 = vmatmul.mubr.bf16.vlgmr.msra.gmra.mrb[8].mxu0 %v499_v9 }
 0x3a3   :  { %v727_v10 = vpop.f32.mrb[8].mxu0 }
 0x3a4   :  { %734 = vst [vmem:[#allocation2] sm:$0x3] %v727_v10  ;;  %765 = vst [vmem:[#allocation2 + $0x6] sm:$0xc] %v727_v10  ;;  %746 = vrot.lane.b32.xlu1 %v727_v10, %s1085_s6  ;;  %737 = vrot.lane.b32.xlu0 %v727_v10, %s1086_s21  ;;  %v729_v11 = vpop.f32.mrb[9].mxu0 }
 0x3a5   :  { %v731_v12 = vpop.f32.mrb[10].mxu0 }
 0x3a6   :  { %v732_v13 = vpop.f32.mrb[11].mxu0 }
 0x3a8   :  { %748 = vrot.lane.b32.xlu1 %v729_v11, %s1085_s6  ;;  %739 = vrot.lane.b32.xlu0 %v729_v11, %s1086_s21 }
 0x3ac   :  { %757 = vrot.lane.b32.xlu1 %v729_v11, %s1087_s22  ;;  %755 = vrot.lane.b32.xlu0 %v727_v10, %s1087_s22 }
 0x416   :  { %v747_v14 = vpop.permute.xlu1 %746  ;;  %v738_v15 = vpop.permute.xlu0 %737 }
 0x41a   :  { %v749_v16 = vpop.permute.xlu1 %748  ;;  %v740_v17 = vpop.permute.xlu0 %739 }
 0x41b   :  { %v751_v18 = vsel %vm750_vm9, %v747_v14, %v749_v16  ;;  %v742_v19 = vsel %vm741_vm10, %v738_v15, %v740_v17 }
 0x41c   :  { %754 = vst [vmem:[#allocation2 + $0x4] sm:$0x3] %v751_v18  ;;  %769 = vst [vmem:[#allocation2 + $0xa] sm:$0xc] %v751_v18 }
 0x41d   :  { %745 = vst [vmem:[#allocation2 + $0x2] sm:$0x3] %v742_v19  ;;  %767 = vst [vmem:[#allocation2 + $0x8] sm:$0xc] %v742_v19 }
 0x41e   :  { %v758_v20 = vpop.permute.xlu1 %757  ;;  %v756_v21 = vpop.permute.xlu0 %755 }
 0x41f   :  { %v760_v22 = vsel %vm759_vm11, %v756_v21, %v758_v20 }
 0x420   :  { %763 = vst [vmem:[#allocation2 + $0x6] sm:$0x3] %v760_v22  ;;  %771 = vst [vmem:[#allocation2 + $0xc] sm:$0xc] %v760_v22 }
 0x421   :  { %1067 = shalt.err (!%p1064_p4)
}
 0x422   :  { %s1068_s27 = scalar_lea.hbm %s1405_s7, 256 }
 0x423   :  { %p1069_p5 = scmp.ne.s32.totalorder %s1405_s7, %s1068_s27  ;;  %p1072_p6 = scmp.lt.u32.totalorder %s1068_s27, %s1405_s7 }
 0x425   :  { %p1074_p7 = pnand %p1072_p6, %p1069_p5 }
 0x427   :  { %1077 = shalt.err (!%p1074_p7)
}
 0x428   :  { %s1089_s30 = smov 32   ;;  %s1090_s8 = smov 2  }
 0x429   :  { %783 = dma.vmem_to_hbm [thread:$0]  %s778_s24, 256, %s1405_s7, [#allocation3], %s1089_s30, %s1089_s30, %s1090_s8  }
 0x42a   :  { %1078 = dma.done.wait [#allocation3], 256  }
 0x42b   :  { %1079 = vsyncadd [#allocation3], 4294967040 }
 0x42c   :  { %787 = vsyncpa [#allocation3], 1 }

</bundles_post_ra>
